<compile_context>
chip_gen: v5e
topology: v5e:2x2
jax: 0.10.0
libtpu: 0.0.40
codegen_flags: <defaults>
</compile_context>

<pallas_src>
import jax
import jax.numpy as jnp
from jax import lax
from jax.experimental import pallas as pl
from jax.experimental.pallas import tpu as pltpu

# ----------------------------- configuration --------------------------------
N_NODES = 16        # number of graph nodes
IN_HIDDEN = 32      # in_hidden
OUT_HIDDEN = 16     # out_hidden
P1 = 0.2            # dropout probability p1
BN_EPS = 1e-5


def _decoder1_kernel(prelu_ref,                       # SMEM (2,)  [a1, a2]
                     adj_ref, x_ref, u_ref, w_ref,    # VMEM tensors
                     affine_ref,                      # VMEM (3, F) [b; gamma; beta]
                     o_ref):
    # ---- Dropout(p1), training mode (uniforms precomputed on host) ----
    x = x_ref[...]
    if P1 > 0.0:
        keep = u_ref[...] >= P1
        x = jnp.where(keep, x * (1.0 / (1.0 - P1)), 0.0)

    # ---- GraphConv(norm='none'): A @ (X W) + b, then PReLU_1 ----
    # bf16 MXU operands (exact for adj entries in {0,1}), f32 accumulation.
    xw = jnp.dot(x.astype(jnp.bfloat16), w_ref[...].astype(jnp.bfloat16),
                 preferred_element_type=jnp.float32)
    h = jnp.dot(adj_ref[...].astype(jnp.bfloat16), xw.astype(jnp.bfloat16),
                preferred_element_type=jnp.float32)
    h = h + affine_ref[0:1, :]                        # bias, (1, F) broadcast
    a1 = prelu_ref[0]
    h = jnp.where(h > 0, h, a1 * h)

    # ---- BatchNorm1d over the node (batch) dim, training stats, one pass ----
    n_inv = 1.0 / float(h.shape[0])
    mean = jnp.sum(h, axis=0, keepdims=True) * n_inv
    msq = jnp.sum(h * h, axis=0, keepdims=True) * n_inv
    var = jnp.maximum(msq - mean * mean, 0.0)         # biased var
    h = (h - mean) * lax.rsqrt(var + BN_EPS)
    h = affine_ref[1:2, :] * h + affine_ref[2:3, :]   # gamma * h + beta

    # ---- PReLU_2 (self.act) ----
    a2 = prelu_ref[1]
    h = jnp.where(h > 0, h, a2 * h)

    o_ref[...] = h.astype(o_ref.dtype)


def decoder1_forward(adj, feat, params, dropout_key):
    """adj:  (N, N) f32 dense adjacency (row = destination node).
       feat: (N, IN_HIDDEN) f32 node features."""
    n, _ = feat.shape

    # Dropout uniforms generated outside the kernel (portable to interpret mode).
    u = jax.random.uniform(dropout_key, feat.shape, jnp.float32)

    # Pack small parameters to cut per-call DMA / argument count.
    prelu = jnp.stack([params["a1"], params["a2"]]).astype(jnp.float32)      # (2,)
    affine = jnp.stack([params["b"], params["gamma"], params["beta"]], 0)    # (3, F)

    smem_spec = pl.BlockSpec(memory_space=pltpu.SMEM)
    vmem_spec = pl.BlockSpec(memory_space=pltpu.VMEM)

    # TODO(synk): for many graphs, stack nodes to (B*N, F) with a block-diagonal
    # adjacency and run a "parallel" grid over B to fill the MXU / both v7x TCs.
    return pl.pallas_call(
        _decoder1_kernel,
        out_shape=jax.ShapeDtypeStruct((n, OUT_HIDDEN), jnp.float32),
        in_specs=[smem_spec,                               # [a1, a2]
                  vmem_spec, vmem_spec, vmem_spec,         # adj, feat, dropout u
                  vmem_spec, vmem_spec],                   # w, [b;gamma;beta]
        out_specs=pl.BlockSpec(memory_space=pltpu.VMEM),
    )(prelu, adj, feat, u, params["w"], affine)


def init_params(key):
    scale = 1.0 / jnp.sqrt(jnp.float32(IN_HIDDEN))
    return {
        "w": jax.random.normal(key, (IN_HIDDEN, OUT_HIDDEN), jnp.float32) * scale,
        "b": jnp.zeros((OUT_HIDDEN,), jnp.float32),
        "a1": jnp.asarray(0.25, jnp.float32),   # PReLU default init
        "a2": jnp.asarray(0.25, jnp.float32),
        "gamma": jnp.ones((OUT_HIDDEN,), jnp.float32),
        "beta": jnp.zeros((OUT_HIDDEN,), jnp.float32),
    }
    # TODO(synk): self.ln (LayerNorm) is constructed in __init__ but unused in
    # forward, so it is intentionally omitted here.


if __name__ == "__main__":
    key = jax.random.PRNGKey(0)
    k_feat, k_adj, k_par, k_drop = jax.random.split(key, 4)

    feat = jax.random.normal(k_feat, (N_NODES, IN_HIDDEN), jnp.float32)
    # deterministic dense adjacency (edge v->u stored at A[u, v]) + self loops
    adj = (jax.random.uniform(k_adj, (N_NODES, N_NODES)) < 0.3).astype(jnp.float32)
    adj = jnp.maximum(adj, jnp.eye(N_NODES, dtype=jnp.float32))

    params = init_params(k_par)

    out = decoder1_forward(adj, feat, params, k_drop)
    out = jax.block_until_ready(out)

    assert out.shape == (N_NODES, OUT_HIDDEN)
    assert bool(jnp.all(jnp.isfinite(out)))
    print("KERNEL_OK")
</pallas_src>

<mosaic_0001>
module attributes {stable_mosaic.version = 11 : i64} {
  func.func @_decoder1_kernel(%arg0: memref<2xf32, #tpu.memory_space<smem>>, %arg1: memref<16x16xf32, #tpu.memory_space<vmem>>, %arg2: memref<16x32xf32, #tpu.memory_space<vmem>>, %arg3: memref<16x32xf32, #tpu.memory_space<vmem>>, %arg4: memref<32x16xf32, #tpu.memory_space<vmem>>, %arg5: memref<3x16xf32, #tpu.memory_space<vmem>>, %arg6: memref<16x16xf32, #tpu.memory_space<vmem>>) attributes {dimension_semantics = [], scalar_prefetch = 0 : i64, scratch_operands = 0 : i64, tpu.core_type = #tpu.core_type<tc>} {
    %c0 = arith.constant 0 : index
    %c0_0 = arith.constant 0 : index
    %0 = vector.load %arg2[%c0, %c0_0] : memref<16x32xf32, #tpu.memory_space<vmem>>, vector<16x32xf32>
    %c0_1 = arith.constant 0 : index
    %c0_2 = arith.constant 0 : index
    %1 = vector.load %arg3[%c0_1, %c0_2] : memref<16x32xf32, #tpu.memory_space<vmem>>, vector<16x32xf32>
    %cst = arith.constant 2.000000e-01 : f32
    %2 = vector.broadcast %cst : f32 to vector<16x32xf32>
    %3 = arith.cmpf oge, %1, %2 : vector<16x32xf32>
    %cst_3 = arith.constant 1.250000e+00 : f32
    %4 = vector.broadcast %cst_3 : f32 to vector<16x32xf32>
    %5 = arith.mulf %0, %4 : vector<16x32xf32>
    %cst_4 = arith.constant 0.000000e+00 : f32
    %6 = vector.broadcast %cst_4 : f32 to vector<16x32xf32>
    %7 = arith.select %3, %5, %6 : vector<16x32xi1>, vector<16x32xf32>
    %8 = arith.truncf %7 : vector<16x32xf32> to vector<16x32xbf16>
    %c0_5 = arith.constant 0 : index
    %c0_6 = arith.constant 0 : index
    %9 = vector.load %arg4[%c0_5, %c0_6] : memref<32x16xf32, #tpu.memory_space<vmem>>, vector<32x16xf32>
    %10 = arith.truncf %9 : vector<32x16xf32> to vector<32x16xbf16>
    %cst_7 = arith.constant dense<0.000000e+00> : vector<16x16xf32>
    %11 = tpu.matmul %8, %10, %cst_7 {dimension_numbers = #tpu.dot_dimension_numbers<[1], [0], [0], [1], [0, 0, 1, 1], [], []>} : vector<16x32xbf16>, vector<32x16xbf16>, vector<16x16xf32> -> vector<16x16xf32>
    %c0_8 = arith.constant 0 : index
    %c0_9 = arith.constant 0 : index
    %12 = vector.load %arg1[%c0_8, %c0_9] : memref<16x16xf32, #tpu.memory_space<vmem>>, vector<16x16xf32>
    %13 = arith.truncf %12 : vector<16x16xf32> to vector<16x16xbf16>
    %14 = arith.truncf %11 : vector<16x16xf32> to vector<16x16xbf16>
    %cst_10 = arith.constant dense<0.000000e+00> : vector<16x16xf32>
    %15 = tpu.matmul %13, %14, %cst_10 {dimension_numbers = #tpu.dot_dimension_numbers<[1], [0], [0], [1], [0, 0, 1, 1], [], []>} : vector<16x16xbf16>, vector<16x16xbf16>, vector<16x16xf32> -> vector<16x16xf32>
    %c0_11 = arith.constant 0 : index
    %c0_12 = arith.constant 0 : index
    %16 = vector.load %arg5[%c0_11, %c0_12] : memref<3x16xf32, #tpu.memory_space<vmem>>, vector<1x16xf32>
    %17 = vector.broadcast %16 : vector<1x16xf32> to vector<16x16xf32>
    %18 = arith.addf %15, %17 : vector<16x16xf32>
    %c0_13 = arith.constant 0 : index
    %19 = memref.load %arg0[%c0_13] : memref<2xf32, #tpu.memory_space<smem>>
    %cst_14 = arith.constant 0.000000e+00 : f32
    %20 = vector.broadcast %cst_14 : f32 to vector<16x16xf32>
    %21 = arith.cmpf ogt, %18, %20 : vector<16x16xf32>
    %22 = vector.broadcast %19 : f32 to vector<16x16xf32>
    %23 = arith.mulf %22, %18 : vector<16x16xf32>
    %24 = arith.select %21, %18, %23 : vector<16x16xi1>, vector<16x16xf32>
    %cst_15 = arith.constant dense<0.000000e+00> : vector<16xf32>
    %25 = vector.multi_reduction <add>, %24, %cst_15 [0] : vector<16x16xf32> to vector<16xf32>
    %26 = vector.shape_cast %25 : vector<16xf32> to vector<1x16xf32>
    %cst_16 = arith.constant 6.250000e-02 : f32
    %27 = vector.broadcast %cst_16 : f32 to vector<1x16xf32>
    %28 = arith.mulf %26, %27 : vector<1x16xf32>
    %29 = arith.mulf %24, %24 : vector<16x16xf32>
    %cst_17 = arith.constant dense<0.000000e+00> : vector<16xf32>
    %30 = vector.multi_reduction <add>, %29, %cst_17 [0] : vector<16x16xf32> to vector<16xf32>
    %31 = vector.shape_cast %30 : vector<16xf32> to vector<1x16xf32>
    %cst_18 = arith.constant 6.250000e-02 : f32
    %32 = vector.broadcast %cst_18 : f32 to vector<1x16xf32>
    %33 = arith.mulf %31, %32 : vector<1x16xf32>
    %34 = arith.mulf %28, %28 : vector<1x16xf32>
    %35 = arith.subf %33, %34 : vector<1x16xf32>
    %cst_19 = arith.constant 0.000000e+00 : f32
    %36 = vector.broadcast %cst_19 : f32 to vector<1x16xf32>
    %37 = arith.maximumf %35, %36 : vector<1x16xf32>
    %38 = vector.broadcast %28 : vector<1x16xf32> to vector<16x16xf32>
    %39 = arith.subf %24, %38 : vector<16x16xf32>
    %cst_20 = arith.constant 9.99999974E-6 : f32
    %40 = vector.broadcast %cst_20 : f32 to vector<1x16xf32>
    %41 = arith.addf %37, %40 : vector<1x16xf32>
    %42 = math.rsqrt %41 : vector<1x16xf32>
    %43 = vector.broadcast %42 : vector<1x16xf32> to vector<16x16xf32>
    %44 = arith.mulf %39, %43 : vector<16x16xf32>
    %c1 = arith.constant 1 : index
    %c0_21 = arith.constant 0 : index
    %45 = vector.load %arg5[%c1, %c0_21] : memref<3x16xf32, #tpu.memory_space<vmem>>, vector<1x16xf32>
    %46 = vector.broadcast %45 : vector<1x16xf32> to vector<16x16xf32>
    %47 = arith.mulf %46, %44 : vector<16x16xf32>
    %c2 = arith.constant 2 : index
    %c0_22 = arith.constant 0 : index
    %48 = vector.load %arg5[%c2, %c0_22] : memref<3x16xf32, #tpu.memory_space<vmem>>, vector<1x16xf32>
    %49 = vector.broadcast %48 : vector<1x16xf32> to vector<16x16xf32>
    %50 = arith.addf %47, %49 : vector<16x16xf32>
    %c1_23 = arith.constant 1 : index
    %51 = memref.load %arg0[%c1_23] : memref<2xf32, #tpu.memory_space<smem>>
    %cst_24 = arith.constant 0.000000e+00 : f32
    %52 = vector.broadcast %cst_24 : f32 to vector<16x16xf32>
    %53 = arith.cmpf ogt, %50, %52 : vector<16x16xf32>
    %54 = vector.broadcast %51 : f32 to vector<16x16xf32>
    %55 = arith.mulf %54, %50 : vector<16x16xf32>
    %56 = arith.select %53, %50, %55 : vector<16x16xi1>, vector<16x16xf32>
    %c0_25 = arith.constant 0 : index
    %c0_26 = arith.constant 0 : index
    %57 = vector.load %arg6[%c0_25, %c0_26] : memref<16x16xf32, #tpu.memory_space<vmem>>, vector<16x16xf32>
    tpu.vector_store %arg6[%c0_25, %c0_26], %56 {strides = array<i32>} : memref<16x16xf32, #tpu.memory_space<vmem>>, vector<16x16xf32>,
    return
  }
}

</mosaic_0001>

<bundles_post_ra>
// kernel: tpu_custom_call.1
= control target key start
LH: loop header
LB: loop body
LE: loop exit
PB: predicated region body
PF: predicated region fallthrough
CT: control target
= control target key end

     0   :  { %11 = vsyncpa [#allocation4], 0  ;;  %s325_s0 = inlined_call_operand.hbm [shape: f32[2], index: 0, kind: input, shape index: {}]   ;;  %s326_s1 = inlined_call_operand.vmem [shape: f32[16,16], index: 1, kind: input, shape index: {}]   ;;  %s327_s2 = inlined_call_operand.vmem [shape: f32[16,32], index: 2, kind: input, shape index: {}]   ;;  %s328_s3 = inlined_call_operand.vmem [shape: f32[16,32], index: 3, kind: input, shape index: {}]   ;;  %s329_s4 = inlined_call_operand.vmem [shape: f32[32,16], index: 4, kind: input, shape index: {}]   ;;  %s330_s5 = inlined_call_operand.vmem [shape: f32[3,16], index: 5, kind: input, shape index: {}]   ;;  %s331_s6 = inlined_call_operand.hbm [shape: f32[16,16], index: 6, kind: output, shape index: {}]  }
   0x1   :  { %12 = vsyncpa [#allocation3], 0  ;;  %s18_s23 = sshll.u32 %s325_s0, 4  ;;  %s234_s24 = smov [#allocation2]   ;;  %s19_s23 = int_to_ptr.hbm [resolvable:$true] %s18_s23 }
   0x2   :  { %21 = dma.hbm_to_smem %s19_s23, 16, %s234_s24, [#allocation4]  }
   0x3   :  { %230 = dma.done.wait [#allocation4], 16  }
   0x4   :  { %231 = vsyncadd [#allocation4], 4294967280 }
   0x5   :  { %36 = sfence }
   0x6   :  { %v51_v0 = vld [vmem:[%s329_s4 + $0x10] sm:$0xff]  ;;  %v52_v1 = vld [vmem:[%s329_s4 + $0x18] sm:$0xff]  ;;  %v49_v2 = vld [vmem:[%s329_s4] sm:$0xff]  ;;  %vm55_vm2 = vcmask 261120   ;;  %vm79_vm3 = vcmask 130048   ;;  %s235_s24 = smov [#allocation5]  }
   0x7   :  { %v54_v3 = vpack.c.bf16 %v52_v1, %v51_v0  ;;  %v50_v4 = vld [vmem:[%s329_s4 + $0x8] sm:$0xff]  ;;  %v38_v5 = vld [vmem:[%s327_s2] sm:$0xff]  ;;  %s167_s25 = sshll.u32 %s235_s24, 4  ;;  %s169_s28 = sshll.u32 %s331_s6, 4  ;;  %s168_s25 = int_to_ptr.vmem [resolvable:$true] %s167_s25  ;;  %s170_s28 = int_to_ptr.hbm [resolvable:$true] %s169_s28 }
   0x8   :  { %v39_v6 = vld [vmem:[%s327_s2 + $0x8] sm:$0xff]  ;;  %v40_v7 = vld [vmem:[%s328_s3] sm:$0xff]  ;;  %v44_v9 = vmul.f32 1.25, %v38_v5  ;;  %v53_v11 = vpack.c.bf16 %v50_v4, %v49_v2  ;;  %s237_s29 = smov 8  }
   0x9   :  { %v41_v8 = vld [vmem:[%s328_s3 + $0x8] sm:$0xff]  ;;  %v45_v10 = vmul.f32 1.25, %v39_v6  ;;  %65 = vmatpush.bf16.msra.mxu0 %v54_v3  ;;  %vm42_vm0 = vcmp.ge.f32.partialorder %v40_v7, 0.2  ;;  %v73_v16 = vld [vmem:[%s326_s1] sm:$0xff]  ;;  %s97_s3 = sld [smem:[#allocation2]] }
   0xa   :  { %vm43_vm1 = vcmp.ge.f32.partialorder %v41_v8, 0.2  ;;  %v46_v12 = vsel %vm42_vm0, %v44_v9, 0.0  ;;  %v74_v17 = vld [vmem:[%s326_s1 + $0x8] sm:$0xff]  ;;  %v189_v21 = vld [vmem:[%s330_s5] ss:$0 sm:$0xff] }
   0xb   :  { %v47_v13 = vsel %vm43_vm1, %v45_v10, 0.0  ;;  %v75_v20 = vpack.c.bf16 %v74_v17, %v73_v16  ;;  %s184_s1 = sld [smem:[#allocation2 + $0x1]]  ;;  %v190_v1 = vld [vmem:[%s330_s5 + $0x1] ss:$0 sm:$0xff]  ;;  %v191_v5 = vld [vmem:[%s330_s5 + $0x2] ss:$0 sm:$0xff] }
   0xc   :  { %v48_v14 = vpack.c.bf16 %v47_v13, %v46_v12  ;;  %s236_s5 = smov 128  }
   0xd   :  { %66 = vmatpush.bf16.msra.mxu0 %v53_v11 }
   0xf   :  { %v100_v24 = vstv %s97_s3 }
  0x10   :  { %182 = vmatmul.msk.bf16.vlgmr.msra.gmra.mxu0 %vm55_vm2, %v48_v14 }
  0x11   :  { %v156_v8 = vstv %s184_s1 }
  0x8d   :  { %v68_v15 = vpop.f32.mrf.mxu0 }
  0x95   :  { %v70_v18 = vpop.f32.mrf.mxu0 }
  0x96   :  { %v76_v19 = vpack.c.bf16 %v70_v18, %v68_v15 }
  0x98   :  { %90 = vmatpush.bf16.msra.mxu1 %v76_v19 }
  0x9b   :  { %183 = vmatmul.msk.bf16.vlgmr.msra.gmra.mxu1 %vm79_vm3, %v75_v20 }
 0x118   :  { %v92_v22 = vpop.f32.mrf.mxu1 }
 0x119   :  { %v93_v23 = vadd.f32 %v189_v21, %v92_v22 }
 0x11b   :  { %v101_v25 = vmul.f32 %v100_v24, %v93_v23  ;;  %vm98_vm4 = vcmp.gt.f32.partialorder %v93_v23, 0.0 }
 0x11d   :  { %v103_v27 = vsel %vm98_vm4, %v93_v23, %v101_v25 }
 0x11e   :  { %v115_v30 = vmul.f32 %v103_v27, %v103_v27  ;;  %v105_v32 = vsel %vm79_vm3, %v103_v27, 0.0 }
 0x120   :  { %v94_v26 = vpop.f32.mrf.mxu1  ;;  %v117_v36 = vsel %vm79_vm3, %v115_v30, 0.0 }
 0x121   :  { %v95_v28 = vadd.f32 %v189_v21, %v94_v26 }
 0x123   :  { %vm99_vm5 = vcmp.gt.f32.partialorder %v95_v28, 0.0  ;;  %v102_v29 = vmul.f32 %v100_v24, %v95_v28 }
 0x125   :  { %v104_v31 = vsel %vm99_vm5, %v95_v28, %v102_v29 }
 0x126   :  { %v106_v33 = vsel %vm79_vm3, %v104_v31, 0.0  ;;  %v116_v34 = vmul.f32 %v104_v31, %v104_v31 }
 0x127   :  { %v107_v35 = vadd.f32 %v106_v33, %v105_v32 }
 0x128   :  { %v118_v37 = vsel %vm79_vm3, %v116_v34, 0.0 }
 0x129   :  { %v108_v38 = vrot.slane %v107_v35, 4  ;;  %v119_v39 = vadd.f32 %v118_v37, %v117_v36 }
 0x12b   :  { %v109_v40 = vadd.f32 %v108_v38, %v107_v35  ;;  %v120_v41 = vrot.slane %v119_v39, 4 }
 0x12d   :  { %v110_v42 = vrot.slane %v109_v40, 2  ;;  %v121_v43 = vadd.f32 %v120_v41, %v119_v39 }
 0x12f   :  { %v111_v44 = vadd.f32 %v110_v42, %v109_v40  ;;  %v122_v45 = vrot.slane %v121_v43, 2 }
 0x131   :  { %v112_v46 = vrot.slane %v111_v44, 1  ;;  %v123_v47 = vadd.f32 %v122_v45, %v121_v43 }
 0x133   :  { %v113_v48 = vadd.f32 %v112_v46, %v111_v44  ;;  %v124_v49 = vrot.slane %v123_v47, 1 }
 0x135   :  { %v114_v50 = vmul.f32 0.0625, %v113_v48  ;;  %v125_v51 = vadd.f32 %v124_v49, %v123_v47 }
 0x137   :  { %v126_v52 = vmul.f32 0.0625, %v125_v51  ;;  %v127_v53 = vmul.f32 %v114_v50, %v114_v50  ;;  %v130_v63 = vsub.f32 %v103_v27, %v114_v50  ;;  %v131_v0 = vsub.f32 %v104_v31, %v114_v50 }
 0x139   :  { %v128_v54 = vsub.f32 %v126_v52, %v127_v53 }
 0x13b   :  { %v129_v55 = vmax.f32 %v128_v54, 0.0 }
 0x13d   :  { %v132_v56 = vadd.f32 1e-05, %v129_v55 }
 0x13f   :  { %192 = vrsqrt.f32 %v132_v56  ;;  %vm139_vm7 = vweird.f32 %v132_v56 }
 0x145   :  { %v193_v57 = vpop.eup %192 }
 0x146   :  { %v134_v58 = vmul.f32 %v193_v57, %v132_v56  ;;  %vm140_vm6 = vweird.f32 %v193_v57 }
 0x147   :  { %vm141_vm8 = vmor %vm139_vm7, %vm140_vm6 }
 0x148   :  { %v135_v59 = vmul.f32 %v193_v57, %v134_v58 }
 0x14a   :  { %v136_v60 = vmul.f32 0.5, %v135_v59 }
 0x14c   :  { %v137_v61 = vsub.f32 1.5, %v136_v60 }
 0x14e   :  { %v138_v62 = vmul.f32 %v193_v57, %v137_v61 }
 0x150   :  { %v142_v2 = vsel %vm141_vm8, %v193_v57, %v138_v62 }
 0x151   :  { %v143_v3 = vmul.f32 %v142_v2, %v130_v63  ;;  %v144_v4 = vmul.f32 %v142_v2, %v131_v0 }
 0x153   :  { %v147_v6 = vmul.f32 %v190_v1, %v143_v3  ;;  %v148_v7 = vmul.f32 %v190_v1, %v144_v4 }
 0x155   :  { %v152_v9 = vadd.f32 %v191_v5, %v148_v7  ;;  %v151_v10 = vadd.f32 %v191_v5, %v147_v6 }
 0x157   :  { %vm154_vm9 = vcmp.gt.f32.partialorder %v151_v10, 0.0  ;;  %vm155_vm10 = vcmp.gt.f32.partialorder %v152_v9, 0.0  ;;  %v157_v11 = vmul.f32 %v156_v8, %v151_v10  ;;  %v158_v12 = vmul.f32 %v156_v8, %v152_v9 }
 0x159   :  { %v159_v13 = vsel %vm154_vm9, %v151_v10, %v157_v11  ;;  %v160_v14 = vsel %vm155_vm10, %v152_v9, %v158_v12 }
 0x15a   :  { %161 = vst.msk [vmem:[#allocation5] sm:$0xff] %vm79_vm3, %v159_v13 }
 0x15b   :  { %162 = vst.msk [vmem:[#allocation5 + $0x8] sm:$0xff] %vm79_vm3, %v160_v14 }
 0x15c   :  { %175 = dma.vmem_to_hbm [thread:$0]  %s168_s25, 256, %s170_s28, [#allocation3], %s236_s5, %s236_s5, %s237_s29  }
 0x15d   :  { %232 = dma.done.wait [#allocation3], 256  }
 0x15e   :  { %233 = vsyncadd [#allocation3], 4294967040 }
 0x15f   :  { %180 = vsyncpa [#allocation3], 1 }
 0x160   :  { %181 = vsyncpa [#allocation4], 1 }

</bundles_post_ra>
